<compile_context>
chip_gen: v5e
topology: v5e:2x2
jax: 0.10.0
libtpu: 0.0.40
codegen_flags: <defaults>
</compile_context>

<pallas_src>
import functools
import warnings

import jax
import jax.numpy as jnp
from jax import lax
from jax.experimental import pallas as pl
from jax.experimental.pallas import tpu as pltpu


_UNROLL_MAX_LAYERS = 8   # fully unroll the middle-layer loop up to this many layers
_LANE = 128              # TPU lane width — pad feature dims to multiples of this
_SUBLANE = 8             # sublane granularity for the batch tile


def _round_up(x, m):
    return (x + m - 1) // m * m


def _vmem_limit_bytes():
    """Generation-aware VMEM limit with headroom below physical capacity.

    v5e/v6e: 128 MiB physical -> ~112 MiB limit; v7x: 64 MiB -> ~56 MiB limit.
    Falls back to a conservative 56 MiB if the hardware query is unavailable.
    """
    cap = 64 * 1024 * 1024
    try:
        info = pltpu.get_tpu_info()
        cap = int(getattr(info, "vmem_capacity_bytes", cap))
    except Exception:  # hardware-info query unavailable on this build/backend
        pass
    headroom = max(8 * 1024 * 1024, cap // 8)
    return cap - headroom


# ---------------------------------------------------------------------------
# Kernels
# ---------------------------------------------------------------------------

def encoder_kernel(x_ref, w0_ref, b0_ref, ws_ref, bs_ref, o_ref, *, n_layers):
    """Fused MLP forward for one batch tile, all weights resident in VMEM.

    x_ref  : (tm, Dp)               VMEM  bf16
    w0_ref : (Dp, Hp)               VMEM  bf16  (first linear, pre-transposed [in, out])
    b0_ref : (1, Hp)                VMEM  f32
    ws_ref : (n_layers-1, Hp, Hp)   VMEM  bf16  (remaining linears, pre-transposed)
    bs_ref : (n_layers-1, 1, Hp)    VMEM  f32
    o_ref  : (tm, Hp)               VMEM
    """
    # Layer 0: Linear(input -> hidden) + ReLU (dropout == identity at eval).
    h = jnp.dot(x_ref[...], w0_ref[...], preferred_element_type=jnp.float32)
    h = jnp.maximum(h + b0_ref[...], 0.0)

    n_mid = n_layers - 2  # hidden->hidden layers that carry a ReLU

    def mid_layer(l, h):
        y = jnp.dot(h.astype(jnp.bfloat16), ws_ref[l],
                    preferred_element_type=jnp.float32)
        return jnp.maximum(y + bs_ref[l], 0.0)

    if n_mid > 0:
        if n_mid <= _UNROLL_MAX_LAYERS:
            # Static unroll: static weight indices, best scheduling.
            for l in range(n_mid):
                h = mid_layer(l, h)
        else:
            # Very deep net: bound code size with a fori_loop.
            h = lax.fori_loop(0, n_mid, mid_layer, h)

    # Final layer: Linear(hidden -> hidden), no activation.
    h = jnp.dot(h.astype(jnp.bfloat16), ws_ref[n_layers - 2],
                preferred_element_type=jnp.float32)
    h = h + bs_ref[n_layers - 2]
    o_ref[...] = h.astype(o_ref.dtype)


def encoder_stream_kernel(x_ref, w0_ref, b0_ref, bs_ref, ws_hbm, o_ref,
                          wbuf, sem, *, n_layers):
    """Same math, but the (Hp, Hp) layer weights stay in HBM and are streamed through a
    manual 2-deep double buffer, overlapping layer-l compute with layer-(l+1) fetch.

    ws_hbm : (n_layers-1, Hp, Hp)  HBM  bf16  (memory_space=pl.ANY)
    wbuf   : (2, Hp, Hp)           VMEM bf16  scratch (double buffer)
    sem    : DMA semaphores (2,)
    """
    n_rem = n_layers - 1  # streamed hidden->hidden linears

    def fetch(l, slot):
        cp = pltpu.make_async_copy(ws_hbm.at[l], wbuf.at[slot], sem.at[slot])
        cp.start()
        return cp

    copies = [None] * n_rem
    copies[0] = fetch(0, 0)

    # Layer 0 compute overlaps the layer-1 weight DMA.
    h = jnp.dot(x_ref[...], w0_ref[...], preferred_element_type=jnp.float32)
    h = jnp.maximum(h + b0_ref[...], 0.0)

    # Static unroll: n_layers is a Python constant; static slot indices let the
    # next-layer DMA issue under the current layer's MXU cycles.
    for l in range(n_rem):
        slot = l & 1
        copies[l].wait()
        if l + 1 < n_rem:
            copies[l + 1] = fetch(l + 1, 1 - slot)
        y = jnp.dot(h.astype(jnp.bfloat16), wbuf[slot],
                    preferred_element_type=jnp.float32) + bs_ref[l]
        h = jnp.maximum(y, 0.0) if l < n_rem - 1 else y

    o_ref[...] = h.astype(o_ref.dtype)


# ---------------------------------------------------------------------------
# pallas_call wrappers
# ---------------------------------------------------------------------------

def _call_resident(x_p, w0_p, b0_p, ws_p, bs_p, *, n_layers, tm_eff, Bp, Dp, Hp,
                   out_dtype, single_buffer_weights, vmem_limit):
    # Constant-block-index weights/biases only need one VMEM buffer; Buffered(1)
    # halves their resident footprint vs the default double buffering.
    kw = {"pipeline_mode": pl.Buffered(1)} if single_buffer_weights else {}
    kernel = functools.partial(encoder_kernel, n_layers=n_layers)
    return pl.pallas_call(
        kernel,
        out_shape=jax.ShapeDtypeStruct((Bp, Hp), out_dtype),
        grid_spec=pltpu.PrefetchScalarGridSpec(
            num_scalar_prefetch=0,
            grid=(Bp // tm_eff,),
            in_specs=[
                pl.BlockSpec((tm_eff, Dp), lambda i: (i, 0)),
                pl.BlockSpec((Dp, Hp), lambda i: (0, 0), **kw),
                pl.BlockSpec((1, Hp), lambda i: (0, 0), **kw),
                pl.BlockSpec((n_layers - 1, Hp, Hp), lambda i: (0, 0, 0), **kw),
                pl.BlockSpec((n_layers - 1, 1, Hp), lambda i: (0, 0, 0), **kw),
            ],
            out_specs=pl.BlockSpec((tm_eff, Hp), lambda i: (i, 0)),
        ),
        compiler_params=pltpu.CompilerParams(
            # Batch axis is parallel -> shards across the two TCs on v7x when the
            # grid has >= 2 steps.
            dimension_semantics=("parallel",),
            vmem_limit_bytes=vmem_limit,
        ),
    )(x_p, w0_p, b0_p, ws_p, bs_p)


def _call_streaming(x_p, w0_p, b0_p, ws_p, bs_p, *, n_layers, tm_eff, Bp, Dp, Hp,
                    out_dtype, vmem_limit):
    kernel = functools.partial(encoder_stream_kernel, n_layers=n_layers)
    return pl.pallas_call(
        kernel,
        out_shape=jax.ShapeDtypeStruct((Bp, Hp), out_dtype),
        grid_spec=pltpu.PrefetchScalarGridSpec(
            num_scalar_prefetch=0,
            grid=(Bp // tm_eff,),
            in_specs=[
                pl.BlockSpec((tm_eff, Dp), lambda i: (i, 0)),
                pl.BlockSpec((Dp, Hp), lambda i: (0, 0)),
                pl.BlockSpec((1, Hp), lambda i: (0, 0)),
                pl.BlockSpec((n_layers - 1, 1, Hp), lambda i: (0, 0, 0)),
                pl.BlockSpec(memory_space=pl.ANY),  # ws stays in HBM, streamed manually
            ],
            out_specs=pl.BlockSpec((tm_eff, Hp), lambda i: (i, 0)),
            scratch_shapes=[
                pltpu.VMEM((2, Hp, Hp), jnp.bfloat16),   # layer-weight double buffer
                pltpu.SemaphoreType.DMA((2,)),
            ],
        ),
        compiler_params=pltpu.CompilerParams(
            dimension_semantics=("parallel",),
            vmem_limit_bytes=vmem_limit,
        ),
    )(x_p, w0_p, b0_p, bs_p, ws_p)


# ---------------------------------------------------------------------------
# Public entry point
# ---------------------------------------------------------------------------

def encoder_forward(x, w0, b0, ws, bs, *, n_layers, tm=256, out_dtype=jnp.float32,
                    force_stream_weights=False):
    """Runs the fused Encoder MLP as a single Pallas kernel, tiled over batch.

    x  : (B, input_dim)
    w0 : (input_dim, hidden)              — pre-transposed [in, out]
    b0 : (1, hidden)
    ws : (n_layers-1, hidden, hidden)     — pre-transposed [in, out]
    bs : (n_layers-1, 1, hidden)
    """
    assert n_layers >= 2, "Encoder needs at least 2 linear layers in this layout"
    B, D_in = x.shape
    H = w0.shape[1]
    assert ws.shape[0] == n_layers - 1 and bs.shape[0] == n_layers - 1

    # Lane-dense padding of feature dims (exact: zero rows/cols contribute nothing).
    Dp = max(_LANE, _round_up(D_in, _LANE))
    Hp = max(_LANE, _round_up(H, _LANE))

    # Batch tile: balance tiles to minimise padded rows; prefer >= 2 grid steps so the
    # "parallel" batch axis can shard across v7x's two TensorCores.
    n_tiles = pl.cdiv(B, tm)
    if n_tiles == 1 and B > _SUBLANE:
        n_tiles = 2
    tm_eff = _round_up(pl.cdiv(B, n_tiles), _SUBLANE)
    Bp = tm_eff * n_tiles

    f32, bf16 = jnp.float32, jnp.bfloat16
    # bf16 activations halve the HBM<->VMEM bytes on the bandwidth-bound x stream.
    x_p = jnp.pad(x.astype(bf16), ((0, Bp - B), (0, Dp - D_in)))
    w0_p = jnp.pad(w0.astype(bf16), ((0, Dp - D_in), (0, Hp - H)))
    b0_p = jnp.pad(b0.astype(f32), ((0, 0), (0, Hp - H)))
    ws_p = jnp.pad(ws.astype(bf16), ((0, 0), (0, Hp - H), (0, Hp - H)))
    bs_p = jnp.pad(bs.astype(f32), ((0, 0), (0, 0), (0, Hp - H)))

    vmem_limit = _vmem_limit_bytes()

    # Resident-weight VMEM footprint (bf16, single-buffered) + pipelined activation
    # blocks (double-buffered x and o), leaving a few MiB of scheduling headroom.
    w_resident = 2 * (Dp * Hp + (n_layers - 1) * Hp * Hp)
    act_bytes = 2 * tm_eff * (2 * Dp + jnp.dtype(out_dtype).itemsize * Hp)
    budget = vmem_limit - act_bytes - (4 << 20)

    common = dict(n_layers=n_layers, tm_eff=tm_eff, Bp=Bp, Dp=Dp, Hp=Hp,
                  out_dtype=out_dtype, vmem_limit=vmem_limit)

    if force_stream_weights or w_resident > budget:
        # Weight stack does not fit resident (e.g. large H*n_layers on v7x's 64 MiB
        # VMEM): stream one (Hp, Hp) layer weight at a time.
        out_p = _call_streaming(x_p, w0_p, b0_p, ws_p, bs_p, **common)
    else:
        try:
            out_p = _call_resident(x_p, w0_p, b0_p, ws_p, bs_p,
                                   single_buffer_weights=True, **common)
        except (TypeError, ValueError, NotImplementedError,
                pltpu.LoweringException):
            # This build rejected pl.Buffered(1).  Double-buffered resident weights
            # only if they still fit the budget; otherwise stream from HBM instead of
            # silently blowing the VMEM limit.
            warnings.warn("pl.Buffered(1) unavailable; falling back to "
                          "double-buffered or streamed weights.")
            if 2 * w_resident <= budget:
                out_p = _call_resident(x_p, w0_p, b0_p, ws_p, bs_p,
                                       single_buffer_weights=False, **common)
            else:
                out_p = _call_streaming(x_p, w0_p, b0_p, ws_p, bs_p, **common)

    return out_p[:B, :H]


# ---------------------------------------------------------------------------
# Params + reference + self-test
# ---------------------------------------------------------------------------

def init_encoder_params(key, input_dim, hidden_dim, n_layers):
    """Deterministic parameter init (shapes match the PyTorch module).

    Returns f32 weights already transposed to [in, out] layout for the kernel
    (PyTorch Linear computes x @ W.T + b; here we compute x @ W + b).
    """
    keys = jax.random.split(key, 2 * n_layers)
    w0 = jax.random.normal(keys[0], (input_dim, hidden_dim), jnp.float32) * 0.05
    b0 = jax.random.normal(keys[1], (1, hidden_dim), jnp.float32) * 0.05
    ws, bs = [], []
    for l in range(1, n_layers):
        ws.append(jax.random.normal(keys[2 * l], (hidden_dim, hidden_dim), jnp.float32) * 0.05)
        bs.append(jax.random.normal(keys[2 * l + 1], (1, hidden_dim), jnp.float32) * 0.05)
    ws = jnp.stack(ws, axis=0)   # (n_layers-1, H, H)
    bs = jnp.stack(bs, axis=0)   # (n_layers-1, 1, H)
    return w0, b0, ws, bs


def encoder_reference(x, w0, b0, ws, bs, n_layers):
    """Pure-JAX reference mirroring the PyTorch forward (eval-mode dropout = identity),
    at the same precision as the kernel (bf16 MXU operands, f32 accumulation)."""
    bf16 = jnp.bfloat16
    h = jnp.dot(x.astype(bf16), w0.astype(bf16), preferred_element_type=jnp.float32) + b0
    h = jnp.maximum(h, 0.0)
    for l in range(n_layers - 1):
        h = jnp.dot(h.astype(bf16), ws[l].astype(bf16),
                    preferred_element_type=jnp.float32) + bs[l]
        if l < n_layers - 2:
            h = jnp.maximum(h, 0.0)
    return h


if __name__ == "__main__":
    key = jax.random.PRNGKey(0)
    dropout = 0.1  # nn.Dropout is identity in the eval-mode forward implemented here.

    configs = [
        # (batch, input_dim, hidden_dim, n_layers, force_stream)
        (16, 32, 32, 3, False),   # shallow net, resident weights (Buffered(1) path)
        (16, 32, 32, 6, False),   # deeper net, resident weights, unrolled mid layers
        (8,  24, 40, 2, False),   # no mid layers, single batch tile
        (32, 40, 96, 5, True),    # exercise the HBM weight-streaming double-buffer path
    ]
    for (batch, input_dim, hidden_dim, n_layers, force_stream) in configs:
        key, k_x, k_p = jax.random.split(key, 3)
        x = jax.random.normal(k_x, (batch, input_dim), jnp.float32)
        w0, b0, ws, bs = init_encoder_params(k_p, input_dim, hidden_dim, n_layers)

        out = encoder_forward(x, w0, b0, ws, bs, n_layers=n_layers,
                              force_stream_weights=force_stream)
        out = jax.block_until_ready(out)

        ref = encoder_reference(x, w0, b0, ws, bs, n_layers)
        assert out.shape == (batch, hidden_dim)
        assert jnp.allclose(out, ref, atol=1e-2, rtol=1e-2), (
            f"mismatch vs reference for n_layers={n_layers}, stream={force_stream}: "
            f"max abs err {jnp.max(jnp.abs(out - ref))}")

    print("KERNEL_OK")
</pallas_src>

<mosaic_0001>
module attributes {stable_mosaic.version = 11 : i64} {
  func.func @encoder_kernel(%arg0: i32, %arg1: memref<8x128xbf16, #tpu.memory_space<vmem>>, %arg2: memref<128x128xbf16, #tpu.memory_space<vmem>>, %arg3: memref<1x128xf32, #tpu.memory_space<vmem>>, %arg4: memref<2x128x128xbf16, #tpu.memory_space<vmem>>, %arg5: memref<2x1x128xf32, #tpu.memory_space<vmem>>, %arg6: memref<8x128xf32, #tpu.memory_space<vmem>>) attributes {dimension_semantics = [#tpu.dimension_semantics<parallel>], iteration_bounds = array<i64: 2>, scalar_prefetch = 0 : i64, scratch_operands = 0 : i64, tpu.core_type = #tpu.core_type<tc>, window_params = [{transform_indices = @transform_0, window_bounds = array<i64: 8, 128>}, {pipeline_mode = #tpu.pipeline_mode<synchronous>, transform_indices = @transform_1, window_bounds = array<i64: 128, 128>}, {pipeline_mode = #tpu.pipeline_mode<synchronous>, transform_indices = @transform_2, window_bounds = array<i64: 1, 128>}, {pipeline_mode = #tpu.pipeline_mode<synchronous>, transform_indices = @transform_3, window_bounds = array<i64: 2, 128, 128>}, {pipeline_mode = #tpu.pipeline_mode<synchronous>, transform_indices = @transform_4, window_bounds = array<i64: 2, 1, 128>}, {transform_indices = @transform_5, window_bounds = array<i64: 8, 128>}]} {
    %c0 = arith.constant 0 : index
    %c0_0 = arith.constant 0 : index
    %0 = vector.load %arg1[%c0, %c0_0] : memref<8x128xbf16, #tpu.memory_space<vmem>>, vector<8x128xbf16>
    %c0_1 = arith.constant 0 : index
    %c0_2 = arith.constant 0 : index
    %1 = vector.load %arg2[%c0_1, %c0_2] : memref<128x128xbf16, #tpu.memory_space<vmem>>, vector<128x128xbf16>
    %cst = arith.constant dense<0.000000e+00> : vector<8x128xf32>
    %2 = tpu.matmul %0, %1, %cst {dimension_numbers = #tpu.dot_dimension_numbers<[1], [0], [0], [1], [0, 0, 1, 1], [], []>} : vector<8x128xbf16>, vector<128x128xbf16>, vector<8x128xf32> -> vector<8x128xf32>
    %c0_3 = arith.constant 0 : index
    %c0_4 = arith.constant 0 : index
    %3 = vector.load %arg3[%c0_3, %c0_4] : memref<1x128xf32, #tpu.memory_space<vmem>>, vector<1x128xf32>
    %4 = vector.broadcast %3 : vector<1x128xf32> to vector<8x128xf32>
    %5 = arith.addf %2, %4 : vector<8x128xf32>
    %cst_5 = arith.constant 0.000000e+00 : f32
    %6 = vector.broadcast %cst_5 : f32 to vector<8x128xf32>
    %7 = arith.maximumf %5, %6 : vector<8x128xf32>
    %8 = arith.truncf %7 : vector<8x128xf32> to vector<8x128xbf16>
    %c0_6 = arith.constant 0 : index
    %c0_7 = arith.constant 0 : index
    %c0_8 = arith.constant 0 : index
    %9 = vector.load %arg4[%c0_6, %c0_7, %c0_8] : memref<2x128x128xbf16, #tpu.memory_space<vmem>>, vector<1x128x128xbf16>
    %10 = vector.shape_cast %9 : vector<1x128x128xbf16> to vector<128x128xbf16>
    %cst_9 = arith.constant dense<0.000000e+00> : vector<8x128xf32>
    %11 = tpu.matmul %8, %10, %cst_9 {dimension_numbers = #tpu.dot_dimension_numbers<[1], [0], [0], [1], [0, 0, 1, 1], [], []>} : vector<8x128xbf16>, vector<128x128xbf16>, vector<8x128xf32> -> vector<8x128xf32>
    %c0_10 = arith.constant 0 : index
    %c0_11 = arith.constant 0 : index
    %c0_12 = arith.constant 0 : index
    %12 = vector.load %arg5[%c0_10, %c0_11, %c0_12] : memref<2x1x128xf32, #tpu.memory_space<vmem>>, vector<1x1x128xf32>
    %13 = vector.shape_cast %12 : vector<1x1x128xf32> to vector<1x128xf32>
    %14 = vector.broadcast %13 : vector<1x128xf32> to vector<8x128xf32>
    %15 = arith.addf %11, %14 : vector<8x128xf32>
    %cst_13 = arith.constant 0.000000e+00 : f32
    %16 = vector.broadcast %cst_13 : f32 to vector<8x128xf32>
    %17 = arith.maximumf %15, %16 : vector<8x128xf32>
    %18 = arith.truncf %17 : vector<8x128xf32> to vector<8x128xbf16>
    %c1 = arith.constant 1 : index
    %c0_14 = arith.constant 0 : index
    %c0_15 = arith.constant 0 : index
    %19 = vector.load %arg4[%c1, %c0_14, %c0_15] : memref<2x128x128xbf16, #tpu.memory_space<vmem>>, vector<1x128x128xbf16>
    %20 = vector.shape_cast %19 : vector<1x128x128xbf16> to vector<128x128xbf16>
    %cst_16 = arith.constant dense<0.000000e+00> : vector<8x128xf32>
    %21 = tpu.matmul %18, %20, %cst_16 {dimension_numbers = #tpu.dot_dimension_numbers<[1], [0], [0], [1], [0, 0, 1, 1], [], []>} : vector<8x128xbf16>, vector<128x128xbf16>, vector<8x128xf32> -> vector<8x128xf32>
    %c1_17 = arith.constant 1 : index
    %c0_18 = arith.constant 0 : index
    %c0_19 = arith.constant 0 : index
    %22 = vector.load %arg5[%c1_17, %c0_18, %c0_19] : memref<2x1x128xf32, #tpu.memory_space<vmem>>, vector<1x1x128xf32>
    %23 = vector.shape_cast %22 : vector<1x1x128xf32> to vector<1x128xf32>
    %24 = vector.broadcast %23 : vector<1x128xf32> to vector<8x128xf32>
    %25 = arith.addf %21, %24 : vector<8x128xf32>
    %c0_20 = arith.constant 0 : index
    %c0_21 = arith.constant 0 : index
    %26 = vector.load %arg6[%c0_20, %c0_21] : memref<8x128xf32, #tpu.memory_space<vmem>>, vector<8x128xf32>
    tpu.vector_store %arg6[%c0_20, %c0_21], %25 {strides = array<i32>} : memref<8x128xf32, #tpu.memory_space<vmem>>, vector<8x128xf32>,
    return
  }
  func.func @transform_0(%arg0: i32) -> (i32, i32) {
    %c0_i32 = arith.constant 0 : i32
    %c0_i32_0 = arith.constant 0 : i32
    return %arg0, %c0_i32 : i32, i32
  }
  func.func @transform_1(%arg0: i32) -> (i32, i32) {
    %c0_i32 = arith.constant 0 : i32
    %c0_i32_0 = arith.constant 0 : i32
    %c0_i32_1 = arith.constant 0 : i32
    return %c0_i32, %c0_i32_0 : i32, i32
  }
  func.func @transform_2(%arg0: i32) -> (i32, i32) {
    %c0_i32 = arith.constant 0 : i32
    %c0_i32_0 = arith.constant 0 : i32
    %c0_i32_1 = arith.constant 0 : i32
    return %c0_i32, %c0_i32_0 : i32, i32
  }
  func.func @transform_3(%arg0: i32) -> (i32, i32, i32) {
    %c0_i32 = arith.constant 0 : i32
    %c0_i32_0 = arith.constant 0 : i32
    %c0_i32_1 = arith.constant 0 : i32
    %c0_i32_2 = arith.constant 0 : i32
    return %c0_i32, %c0_i32_0, %c0_i32_1 : i32, i32, i32
  }
  func.func @transform_4(%arg0: i32) -> (i32, i32, i32) {
    %c0_i32 = arith.constant 0 : i32
    %c0_i32_0 = arith.constant 0 : i32
    %c0_i32_1 = arith.constant 0 : i32
    %c0_i32_2 = arith.constant 0 : i32
    return %c0_i32, %c0_i32_0, %c0_i32_1 : i32, i32, i32
  }
  func.func @transform_5(%arg0: i32) -> (i32, i32) {
    %c0_i32 = arith.constant 0 : i32
    %c0_i32_0 = arith.constant 0 : i32
    return %arg0, %c0_i32 : i32, i32
  }
}

</mosaic_0001>

<bundles_post_ra>
// kernel: tpu_custom_call.1
= control target key start
LH: loop header
LB: loop body
LE: loop exit
PB: predicated region body
PF: predicated region fallthrough
CT: control target
= control target key end

     0   :  { %10 = vsyncpa [#allocation3], 0  ;;  %s1194_s0 = inlined_call_operand.hbm [shape: bf16[16,128], index: 0, kind: input, shape index: {}]   ;;  %s1195_s1 = inlined_call_operand.hbm [shape: bf16[128,128], index: 1, kind: input, shape index: {}]   ;;  %s1196_s2 = inlined_call_operand.vmem [shape: f32[1,128], index: 2, kind: input, shape index: {}]   ;;  %s1197_s3 = inlined_call_operand.hbm [shape: bf16[2,128,128], index: 3, kind: input, shape index: {}]   ;;  %s1198_s4 = inlined_call_operand.vmem [shape: f32[2,1,128], index: 4, kind: input, shape index: {}]   ;;  %s1199_s5 = inlined_call_operand.hbm [shape: f32[16,128], index: 5, kind: output, shape index: {}]  }
   0x1   :  { %12 = vsyncpa [#allocation3 + $0x1], 0 }
   0x2   :  { %13 = vsyncpa [#allocation6], 0 }
   0x3   :  { %14 = vsyncpa [#allocation4], 0 }
   0x4   :  { %16 = vsyncpa [#allocation4 + $0x1], 0  ;;  %s1036_s18 = smov 0   ;;  %s1038_s19 = smov 0  }
   0x5   :  { %s1040_s20 = smov 0   ;;  %s1042_s21 = smov 0  }
   0x6 LB: > { %s174_s24 = sshll.u32 %s1195_s1, 4  ;;  %s1060_s25 = sadd.s32 4294967295, %s1000_s21   ;;  %s1000_s21 = sphi %s1042_s21, %s1210_s21   ;;  %s996_s20 = sphi %s1040_s20, %s1209_s20   ;;  %s992_s19 = sphi %s1038_s19, %s1208_s19   ;;  %s988_s18 = sphi %s1036_s18, %s1207_s18   ;;  %s175_s24 = int_to_ptr.hbm [resolvable:$true] %s174_s24 }
   0x7   : > { %p632_p0 = scmp.ge.s32.totalorder %s1000_s21, 1  ;;  %p43_p1 = scmp.eq.s32.totalorder %s1060_s25, 0 }
   0x8   : > { %p163_p2 = scmp.lt.s32.totalorder %s1000_s21, 3  ;;  %s1002_s27 = smov [#allocation5]  }
   0x9   : > { %s176_s28 = sshll.u32 %s1002_s27, 4  ;;  %s191_s6 = sshll.u32 %s1197_s3, 4  ;;  %s177_s28 = int_to_ptr.vmem [resolvable:$true] %s176_s28  ;;  %s192_s6 = int_to_ptr.hbm [resolvable:$true] %s191_s6 }
   0xa   : > { %p1065_p3 = pnand %p632_p0, %p163_p2  ;;  %s1003_s7 = smov [#allocation7]  }
   0xb   : > { %s193_s8 = sshll.u32 %s1003_s7, 4  ;;  %s1004_s9 = smov 64   ;;  %s194_s8 = int_to_ptr.vmem [resolvable:$true] %s193_s8 }
   0xc   : > { %p780_p4 = pneg %p1065_p3  ;;  %s1005_s10 = smov 4  }
   0xd   : > { %s631_s11 = sadd.s32 4294967294, %s1000_s21   ;;  %s1079_s12 = sadd.s32 1, %s1000_s21  }
   0xe   : > { %p781_p6 = pnand %p780_p4, %p43_p1  ;;  %s26_s13 = ssub.s32 %s1000_s21, %s1079_s12 }
   0xf   : > { %s29_s14 = sadd.s32 1, %s996_s20  ;;  %p27_p7 = scmp.eq.s32.totalorder %s26_s13, 0 }
  0x10   : > { %783 = dma.hbm_to_vmem [thread:$0]  (!%p781_p6), %s175_s24, 1024, %s177_s28, [#allocation6], %s1004_s9, %s1004_s9, %s1005_s10  }
  0x11   : > { %786 = dma.hbm_to_vmem [thread:$0]  (!%p781_p6), %s192_s6, 2048, %s194_s8, [#allocation6], %s1004_s9, %s1004_s9, %s1005_s10  }
  0x12   : > { %p36_p8 = scmp.ne.s32.totalorder %s996_s20, %s992_s19  ;;  %p37_p9 = scmp.eq.s32.totalorder %s1000_s21, 0 }
  0x13   : > { %p42_p10 = scmp.ne.s32.totalorder %s992_s19, %s988_s18  ;;  %p150_p13 = scmp.eq.s32.totalorder %s1060_s25, 1 }
  0x14   : > { %s1090_s15 = scalar_select %p27_p7, %s996_s20, %s29_s14  }
  0x15   : > { %p1092_p11 = por %p37_p9, %p36_p8  ;;  %p1098_p12 = por %p43_p1, %p42_p10 }
  0x16   : > { %p156_p0 = scmp.eq.s32.totalorder %s631_s11, 1  ;;  %p797_p2 = scmp.lt.s32.totalorder %s1000_s21, 2 }
  0x17   : > { %s210_s22 = sand.u32 1, %s996_s20   ;;  %p1105_p4 = por %p150_p13, %p36_p8 }
  0x18   : > { %p1109_p6 = por %p156_p0, %p42_p10  ;;  %s636_s27 = sshll.u32 %s210_s22, 2 }
  0x19   : > { %s637_s28 = sshll.u32 %s1000_s21, 2  ;;  %s214_s7 = scalar_lea.vmem [#allocation2], %s636_s27 }
  0x1a   : > { %s218_s6 = scalar_lea.hbm %s1194_s0, %s637_s28  ;;  %s222_s8 = sshll.u32 %s214_s7, 4  ;;  %s223_s8 = int_to_ptr.vmem [resolvable:$true] %s222_s8 }
  0x1b   : > { %s220_s9 = sshll.u32 %s218_s6, 4  ;;  %p1119_p7 = pnand %p797_p2, %p1092_p11  ;;  %s221_s9 = int_to_ptr.hbm [resolvable:$true] %s220_s9 }
  0x1c   : > { %s211_s11 = scalar_lea.sflag [#allocation3], %s210_s22  ;;  %s900_s13 = sshra.s32 %s221_s9, 4  ;;  %s901_s13 = int_to_ptr.hbm [resolvable:$true] %s900_s13 }
  0x1d   : > { %s902_s14 = scalar_lea.hbm %s901_s13, 4  ;;  %p904_p9 = pneg %p1119_p7 }
  0x1e   : > { %p903_p8 = scmp.ne.s32.totalorder %s901_s13, %s902_s14  ;;  %s907_s29 = scalar_lea.hbm %s1194_s0, 8 }
  0x1f   : > { %p908_p11 = scmp.lt.s32.totalorder %s901_s13, %s1194_s0  ;;  %p909_p0 = scmp.lt.s32.totalorder %s907_s29, %s902_s14 }
  0x20   : > { %p905_p10 = pnand %p904_p9, %p903_p8 }
  0x21   : > { %p910_p2 = por %p909_p0, %p908_p11 }
  0x22   : > { %p906_p13 = pneg %p905_p10 }
  0x24   : > { %p911_p5 = pnand %p910_p2, %p906_p13 }
  0x26   : > { %914 = shalt.err (!%p911_p5)
}
  0x27   : > { %790 = dma.hbm_to_vmem [thread:$0]  (!%p1119_p7), %s221_s9, 64, %s223_s8, %s211_s11  }
  0x28   : > { %231 = sbr.rel (%p1065_p3) target bundleno = 484 (0x1e4), region = 40  ;;  %s1136_s22 = sand.u32 (!%p1065_p3), 1, %s992_s19  }
  0x29   : > { %s639_s6 = sshll.u32 (!%p1065_p3), %s1136_s22, 2  ;;  %s234_s7 = scalar_lea.sflag (!%p1065_p3), [#allocation3], %s1136_s22 }
  0x2a   : > { %s1140_s27 = scalar_lea.vmem (!%p1065_p3), [#allocation2], %s639_s6 }
  0x2d   : > { %975 = dma.done.wait (%p1098_p12), %s234_s7, 64  }
  0x2e   : > { %977 = vsyncadd (%p1098_p12), %s234_s7, 4294967232 }
  0x2f   : > { %979 = dma.done.wait (%p43_p1), [#allocation6], 3072  }
  0x30   : > { %981 = vsyncadd (%p43_p1), [#allocation6], 4294964224  ;;  %v751_v0 = vld [vmem:[#allocation5 + $0x38] sm:$0xff]  ;;  %v750_v1 = vld [vmem:[#allocation5 + $0x30] sm:$0xff]  ;;  %s741_s10 = sshll.u32 %s1060_s25, 3  ;;  %s642_s11 = sshll.u32 %s1136_s22, 3 }
  0x31   : > { %344 = vmatpush.bf16.msra.mxu0 %v751_v0  ;;  %v759_v2 = vld [vmem:[#allocation7 + $0x38] sm:$0xff]  ;;  %v758_v3 = vld [vmem:[#allocation7 + $0x30] sm:$0xff]  ;;  %v749_v4 = vld [vmem:[#allocation5 + $0x28] sm:$0xff]  ;;  %s537_s28 = scalar_lea.hbm %s1199_s5, %s741_s10  ;;  %s274_s16 = scalar_lea.vmem [#allocation8], %s642_s11 }
  0x32   : > { %427 = vmatpush.bf16.msra.mxu1 %v759_v2  ;;  %v757_v5 = vld [vmem:[#allocation7 + $0x28] sm:$0xff]  ;;  %v748_v6 = vld [vmem:[#allocation5 + $0x20] sm:$0xff]  ;;  %v747_v8 = vld [vmem:[#allocation5 + $0x18] sm:$0xff]  ;;  %s539_s6 = sshll.u32 %s274_s16, 4  ;;  %s541_s7 = sshll.u32 %s537_s28, 4  ;;  %s540_s6 = int_to_ptr.vmem [resolvable:$true] %s539_s6  ;;  %s542_s7 = int_to_ptr.hbm [resolvable:$true] %s541_s7 }
  0x33   : > { %v756_v7 = vld [vmem:[#allocation7 + $0x20] sm:$0xff]  ;;  %v755_v9 = vld [vmem:[#allocation7 + $0x18] sm:$0xff]  ;;  %v746_v10 = vld [vmem:[#allocation5 + $0x10] sm:$0xff]  ;;  %s944_s25 = sshra.s32 %s542_s7, 4  ;;  %s950_s9 = scalar_lea.hbm %s1199_s5, 16  ;;  %s945_s25 = int_to_ptr.hbm [resolvable:$true] %s944_s25 }
  0x34   : > { %v754_v11 = vld [vmem:[#allocation7 + $0x10] sm:$0xff]  ;;  %v745_v12 = vld [vmem:[#allocation5 + $0x8] sm:$0xff]  ;;  %v744_v13 = vld [vmem:[#allocation5] sm:$0xff]  ;;  %s946_s26 = scalar_lea.hbm %s945_s25, 8  ;;  %p951_p12 = scmp.lt.s32.totalorder %s945_s25, %s1199_s5 }
  0x35   : > { %345 = vmatpush.bf16.msra.mxu0 %v750_v1  ;;  %v275_v14 = vld [vmem:[%s1140_s27] sm:$0xf]  ;;  %v753_v15 = vld [vmem:[#allocation7 + $0x8] sm:$0xff]  ;;  %v752_v16 = vld [vmem:[#allocation7] sm:$0xff]  ;;  %s527_s27 = scalar_lea.sflag [#allocation4], %s1136_s22  ;;  %p947_p1 = scmp.ne.s32.totalorder %s945_s25, %s946_s26 }
  0x36   : > { %428 = vmatpush.bf16.msra.mxu1 %v758_v3  ;;  %v767_v17 = vld [vmem:[#allocation7 + $0x78] sm:$0xff]  ;;  %v766_v18 = vld [vmem:[#allocation7 + $0x70] sm:$0xff]  ;;  %v765_v19 = vld [vmem:[#allocation7 + $0x68] sm:$0xff]  ;;  %p952_p7 = scmp.lt.s32.totalorder %s950_s9, %s946_s26 }
  0x37   : > { %512 = vmatpush.bf16.msra.mxu2 %v767_v17  ;;  %v764_v20 = vld [vmem:[#allocation7 + $0x60] sm:$0xff]  ;;  %v763_v21 = vld [vmem:[#allocation7 + $0x58] sm:$0xff]  ;;  %v762_v22 = vld [vmem:[#allocation7 + $0x50] sm:$0xff]  ;;  %p948_p3 = pnand %p947_p1, %p1105_p4 }
  0x38   : > { %v837_v23 = vld [vmem:[%s1196_s2] ss:$0 sm:$0xff]  ;;  %v761_v29 = vld [vmem:[#allocation7 + $0x48] sm:$0xff]  ;;  %v760_v30 = vld [vmem:[#allocation7 + $0x40] sm:$0xff]  ;;  %p953_p8 = por %p952_p7, %p951_p12 }
  0x39   : > { %346 = vmatpush.bf16.msra.mxu0 %v749_v4  ;;  %v838_v31 = vld [vmem:[%s1198_s4] ss:$0 sm:$0xff]  ;;  %v839_v37 = vld [vmem:[%s1198_s4 + $0x1] ss:$0 sm:$0xff]  ;;  %p949_p5 = pneg %p948_p3 }
  0x3a   : > { %429 = vmatpush.bf16.msra.mxu1 %v757_v5 }
  0x3b   : > { %513 = vmatpush.bf16.msra.mxu2 %v766_v18  ;;  %p954_p9 = pnand %p953_p8, %p949_p5 }
  0x3d   : > { %347 = vmatpush.bf16.msra.mxu0 %v748_v6 }
  0x3e   : > { %430 = vmatpush.bf16.msra.mxu1 %v756_v7 }
  0x3f   : > { %514 = vmatpush.bf16.msra.mxu2 %v765_v19 }
  0x41   : > { %348 = vmatpush.bf16.msra.mxu0 %v747_v8 }
  0x42   : > { %431 = vmatpush.bf16.msra.mxu1 %v755_v9 }
  0x43   : > { %515 = vmatpush.bf16.msra.mxu2 %v764_v20 }
  0x45   : > { %349 = vmatpush.bf16.msra.mxu0 %v746_v10 }
  0x46   : > { %432 = vmatpush.bf16.msra.mxu1 %v754_v11 }
  0x47   : > { %516 = vmatpush.bf16.msra.mxu2 %v763_v21 }
  0x49   : > { %350 = vmatpush.bf16.msra.mxu0 %v745_v12 }
  0x4a   : > { %433 = vmatpush.bf16.msra.mxu1 %v753_v15 }
  0x4b   : > { %517 = vmatpush.bf16.msra.mxu2 %v762_v22 }
  0x4d   : > { %351 = vmatpush.bf16.msra.mxu0 %v744_v13 }
  0x4e   : > { %434 = vmatpush.bf16.msra.mxu1 %v752_v16 }
  0x4f   : > { %518 = vmatpush.bf16.msra.mxu2 %v761_v29 }
  0x50   : > { %352 = vmatmul.bf16.vlgmr.msra.gmra.mxu0 %v275_v14 }
  0x53   : > { %519 = vmatpush.bf16.msra.mxu2 %v760_v30 }
  0xcd   : > { %v353_v24 = vpop.f32.mrf.mxu0 }
  0xce   : > { %v354_v25 = vadd.f32 %v837_v23, %v353_v24 }
  0xd0   : > { %v357_v26 = vmax.f32 %v354_v25, 0.0 }
  0xd2   : > { %v358_v27 = vpack.c.bf16 %v357_v26, %v357_v26 }
  0xd4   : > { %435 = vmatmul.bf16.vlgmr.msra.gmra.mxu1 %v358_v27 }
  0xd5   : > { %v355_v28 = vpop.f32.mrf.mxu0 }
 0x151   : > { %v436_v32 = vpop.f32.mrf.mxu1 }
 0x152   : > { %v437_v33 = vadd.f32 %v838_v31, %v436_v32 }
 0x154   : > { %v440_v34 = vmax.f32 %v437_v33, 0.0 }
 0x156   : > { %v441_v35 = vpack.c.bf16 %v440_v34, %v440_v34 }
 0x158   : > { %520 = vmatmul.bf16.vlgmr.msra.gmra.mxu2 %v441_v35 }
 0x159   : > { %v438_v36 = vpop.f32.mrf.mxu1 }
 0x1db   : > { %v521_v38 = vpop.f32.mrf.mxu2 }
 0x1dc   : > { %v522_v39 = vadd.f32 %v839_v37, %v521_v38 }
 0x1de   : > { %525 = vst [vmem:[%s274_s16] sm:$0xff] %v522_v39 }
 0x1df   : > { %957 = shalt.err (!%p954_p9)
}
 0x1e0   : > { %778 = dma.vmem_to_hbm [thread:$0]  (%p1105_p4), %s540_s6, 128, %s542_s7, %s527_s27  }
 0x1e3   : > { %v523_v40 = vpop.f32.mrf.mxu2 }
 0x1e4 PF: > { %s553_s22 = sand.u32 1, %s988_s18   ;;  %p1206_p10 = scmp.ge.s32.totalorder %s1000_s21, 2 }
 0x1e5   : > { %s554_s13 = scalar_lea.sflag [#allocation4], %s553_s22 }
 0x1e6   : > { %p792_p13 = pnand %p1206_p10, %p1109_p6 }
 0x1e8   : > { %p793_p11 = pneg %p792_p13 }
 0x1ea   : > { %983 = dma.done.wait (%p793_p11), %s554_s13, 128  }
 0x1eb   : > { %985 = vsyncadd (%p793_p11), %s554_s13, 4294967168  ;;  %p19_p0 = scmp.ge.s32.totalorder %s1079_s12, 4   ;;  %s1207_s18 = smov %s992_s19 }
 0x1ec   : > { %s1208_s19 = smov %s996_s20  ;;  %s1209_s20 = smov %s1090_s15 }
 0x1ed   : > { %s1210_s21 = smov %s1079_s12  ;;  %21 = sbr.rel (!%p19_p0) target bundleno = 6 (0x6), region = 95 }
 0x1f2   :  { %560 = vsyncpa [#allocation3], 1 }
 0x1f3   :  { %562 = vsyncpa [#allocation3 + $0x1], 1 }
 0x1f4   :  { %563 = vsyncpa [#allocation6], 1 }
 0x1f5   :  { %564 = vsyncpa [#allocation4], 1 }
 0x1f6   :  { %566 = vsyncpa [#allocation4 + $0x1], 1 }

</bundles_post_ra>
